<compile_context>
chip_gen: v7x
topology: tpu7x:2x2x1
jax: 0.10.0
libtpu: 0.0.40
codegen_flags: <defaults>
</compile_context>

<pallas_src>
import functools

import jax
import jax.numpy as jnp
from jax.experimental import pallas as pl
from jax.experimental.pallas import tpu as pltpu


def _num_as_mapsum_kernel(
    x_ref, h_ref,
    we_ref, be_ref,
    wce_ref, wch_ref, bc_ref,
    wro_ref, bro_ref,
    map_ref, hnew_ref,
):
    H = hnew_ref.shape[1]

    x = x_ref[...]
    h = h_ref[...]

    # ---- embedding + LeakyReLU(0.1) ----
    e = jnp.dot(x, we_ref[...], preferred_element_type=jnp.float32) + be_ref[...]
    e = jnp.where(e > 0, e, 0.1 * e)

    # ---- RNN2 step with packed i2h|i2o weights: two matmuls instead of four
    packed = (
        jnp.dot(e, wce_ref[...], preferred_element_type=jnp.float32)
        + jnp.dot(h, wch_ref[...], preferred_element_type=jnp.float32)
        + bc_ref[...]
    )
    h_new = jnp.tanh(packed[:, :H])   # i2h half
    out = packed[:, H:]               # i2o half

    # ---- readout (sigmoid + sum done lane-densely in the wrapper) ----
    m = jnp.dot(out, wro_ref[...], preferred_element_type=jnp.float32) + bro_ref[...]

    map_ref[...] = m
    hnew_ref[...] = h_new


@functools.partial(jax.jit, static_argnames=("block_b",))
def num_as_mapsum_forward(x, hidden, params, *, block_b=512):
    B, IN = x.shape
    H = hidden.shape[1]
    MAP = params["w_ro"].shape[1]

    # Batch tile: as large as possible, padded so the (8,128)-style block
    # constraint is satisfied (TB == padded B, or TB % 8 == 0).
    TB = min(block_b, B)
    nblk = -(-B // TB)
    B_pad = nblk * TB
    if B_pad != B:
        x = jnp.pad(x, ((0, B_pad - B), (0, 0)))
        hidden = jnp.pad(hidden, ((0, B_pad - B), (0, 0)))

    act_spec = lambda F: pl.BlockSpec((TB, F), lambda i: (i, 0))
    fix_spec = lambda R, C: pl.BlockSpec((R, C), lambda i: (0, 0))  # resident weights

    flops = 2 * B_pad * (IN * H + 2 * H * (2 * H) + H * MAP)
    transcendentals = B_pad * H  # tanh; sigmoid is in the wrapper
    bytes_accessed = 4 * (
        B_pad * (IN + H + MAP + H)                     # activations in/out
        + IN * H + H + 2 * H * (2 * H) + 2 * H + H * MAP + MAP  # weights/biases
    )

    map_, h_new = pl.pallas_call(
        _num_as_mapsum_kernel,
        out_shape=(
            jax.ShapeDtypeStruct((B_pad, MAP), jnp.float32),
            jax.ShapeDtypeStruct((B_pad, H), jnp.float32),
        ),
        grid=(nblk,),
        in_specs=[
            act_spec(IN),            # x
            act_spec(H),             # hidden
            fix_spec(IN, H),         # w_emb
            fix_spec(1, H),          # b_emb
            fix_spec(H, 2 * H),      # w_comb_e  (i2h | i2o on e)
            fix_spec(H, 2 * H),      # w_comb_h  (i2h | i2o on h)
            fix_spec(1, 2 * H),      # b_comb
            fix_spec(H, MAP),        # w_ro
            fix_spec(1, MAP),        # b_ro
        ],
        out_specs=(act_spec(MAP), act_spec(H)),
        compiler_params=pltpu.CompilerParams(
            dimension_semantics=("parallel",),
            vmem_limit_bytes=32 * 1024 * 1024,
        ),
        cost_estimate=pl.CostEstimate(
            flops=flops,
            transcendentals=transcendentals,
            bytes_accessed=bytes_accessed,
        ),
    )(
        x, hidden,
        params["w_emb"], params["b_emb"],
        params["w_comb_e"], params["w_comb_h"], params["b_comb"],
        params["w_ro"], params["b_ro"],
    )

    map_ = map_[:B]
    h_new = h_new[:B]
    num = jnp.sum(jax.nn.sigmoid(map_), axis=1)   # 9-lane reduce, fused by XLA
    return num, map_, h_new


def init_params(key, input_size, hidden_size, map_size=9):
    """PyTorch-style Linear init U(-1/sqrt(fan_in), 1/sqrt(fan_in)).

    Weights are stored pre-transposed as (in_features, out_features); the
    i2h / i2o weights are packed column-wise into (H, 2H) matrices so the
    kernel runs two wide matmuls instead of four narrow ones.
    """
    def linear(k, fan_in, fan_out):
        k1, k2 = jax.random.split(k)
        bound = 1.0 / jnp.sqrt(fan_in)
        w = jax.random.uniform(k1, (fan_in, fan_out), jnp.float32, -bound, bound)
        b = jax.random.uniform(k2, (1, fan_out), jnp.float32, -bound, bound)
        return w, b

    k_emb, k_i2h, k_i2o, k_ro = jax.random.split(key, 4)
    H = hidden_size
    w_emb, b_emb = linear(k_emb, input_size, H)
    w_i2h, b_i2h = linear(k_i2h, 2 * H, H)   # acts on concat([e, h])
    w_i2o, b_i2o = linear(k_i2o, 2 * H, H)
    w_ro, b_ro = linear(k_ro, H, map_size)

    # Pack: columns [:H] -> i2h output, [H:] -> i2o output.
    w_comb_e = jnp.concatenate([w_i2h[:H], w_i2o[:H]], axis=1)   # (H, 2H)
    w_comb_h = jnp.concatenate([w_i2h[H:], w_i2o[H:]], axis=1)   # (H, 2H)
    b_comb = jnp.concatenate([b_i2h, b_i2o], axis=1)             # (1, 2H)

    return {
        "w_emb": w_emb, "b_emb": b_emb,
        "w_comb_e": w_comb_e, "w_comb_h": w_comb_h, "b_comb": b_comb,
        "w_ro": w_ro, "b_ro": b_ro,
    }


def _ref_forward(x, h, p):
    """Pure-JAX reference of the same forward pass."""
    e = x @ p["w_emb"] + p["b_emb"]
    e = jnp.where(e > 0, e, 0.1 * e)
    packed = e @ p["w_comb_e"] + h @ p["w_comb_h"] + p["b_comb"]
    H = h.shape[1]
    h_new = jnp.tanh(packed[:, :H])
    out = packed[:, H:]
    m = out @ p["w_ro"] + p["b_ro"]
    return jnp.sum(jax.nn.sigmoid(m), axis=1), m, h_new


if __name__ == "__main__":
    B, INPUT, HIDDEN, MAP = 2, 16, 32, 9

    key = jax.random.PRNGKey(0)
    k_p, k_x = jax.random.split(key)
    params = init_params(k_p, INPUT, HIDDEN, MAP)

    x = jax.random.normal(k_x, (B, INPUT), jnp.float32)
    hidden = jnp.zeros((B, HIDDEN), jnp.float32)   # rnn.initHidden()

    num, map_, h_new = num_as_mapsum_forward(x, hidden, params)
    jax.block_until_ready((num, map_, h_new))

    assert num.shape == (B,)
    assert map_.shape == (B, MAP)
    assert h_new.shape == (B, HIDDEN)

    # correctness vs. pure-JAX reference
    rnum, rmap, rh = _ref_forward(x, hidden, params)
    assert jnp.allclose(map_, rmap, atol=1e-5)
    assert jnp.allclose(h_new, rh, atol=1e-5)
    assert jnp.allclose(num, rnum, atol=1e-5)
    # num must equal sum(sigmoid(map), axis=1)
    assert jnp.allclose(num, jnp.sum(jax.nn.sigmoid(map_), axis=1), atol=1e-5)

    print("KERNEL_OK")
</pallas_src>

<mosaic_0001>
module attributes {stable_mosaic.version = 11 : i64} {
  func.func @_num_as_mapsum_kernel(%arg0: i32, %arg1: memref<2x16xf32, #tpu.memory_space<vmem>>, %arg2: memref<2x32xf32, #tpu.memory_space<vmem>>, %arg3: memref<16x32xf32, #tpu.memory_space<vmem>>, %arg4: memref<1x32xf32, #tpu.memory_space<vmem>>, %arg5: memref<32x64xf32, #tpu.memory_space<vmem>>, %arg6: memref<32x64xf32, #tpu.memory_space<vmem>>, %arg7: memref<1x64xf32, #tpu.memory_space<vmem>>, %arg8: memref<32x9xf32, #tpu.memory_space<vmem>>, %arg9: memref<1x9xf32, #tpu.memory_space<vmem>>, %arg10: memref<2x9xf32, #tpu.memory_space<vmem>>, %arg11: memref<2x32xf32, #tpu.memory_space<vmem>>) attributes {dimension_semantics = [#tpu.dimension_semantics<parallel>], iteration_bounds = array<i64: 1>, scalar_prefetch = 0 : i64, scratch_operands = 0 : i64, tpu.core_type = #tpu.core_type<tc>, window_params = [{transform_indices = @transform_0, window_bounds = array<i64: 2, 16>}, {transform_indices = @transform_1, window_bounds = array<i64: 2, 32>}, {pipeline_mode = #tpu.pipeline_mode<synchronous>, transform_indices = @transform_2, window_bounds = array<i64: 16, 32>}, {pipeline_mode = #tpu.pipeline_mode<synchronous>, transform_indices = @transform_3, window_bounds = array<i64: 1, 32>}, {pipeline_mode = #tpu.pipeline_mode<synchronous>, transform_indices = @transform_4, window_bounds = array<i64: 32, 64>}, {pipeline_mode = #tpu.pipeline_mode<synchronous>, transform_indices = @transform_5, window_bounds = array<i64: 32, 64>}, {pipeline_mode = #tpu.pipeline_mode<synchronous>, transform_indices = @transform_6, window_bounds = array<i64: 1, 64>}, {pipeline_mode = #tpu.pipeline_mode<synchronous>, transform_indices = @transform_7, window_bounds = array<i64: 32, 9>}, {pipeline_mode = #tpu.pipeline_mode<synchronous>, transform_indices = @transform_8, window_bounds = array<i64: 1, 9>}, {transform_indices = @transform_9, window_bounds = array<i64: 2, 9>}, {transform_indices = @transform_10, window_bounds = array<i64: 2, 32>}]} {
    %c0 = arith.constant 0 : index
    %c0_0 = arith.constant 0 : index
    %0 = vector.load %arg1[%c0, %c0_0] : memref<2x16xf32, #tpu.memory_space<vmem>>, vector<2x16xf32>
    %c0_1 = arith.constant 0 : index
    %c0_2 = arith.constant 0 : index
    %1 = vector.load %arg2[%c0_1, %c0_2] : memref<2x32xf32, #tpu.memory_space<vmem>>, vector<2x32xf32>
    %c0_3 = arith.constant 0 : index
    %c0_4 = arith.constant 0 : index
    %2 = vector.load %arg3[%c0_3, %c0_4] : memref<16x32xf32, #tpu.memory_space<vmem>>, vector<16x32xf32>
    %cst = arith.constant dense<0.000000e+00> : vector<2x32xf32>
    %3 = tpu.matmul %0, %2, %cst {dimension_numbers = #tpu.dot_dimension_numbers<[1], [0], [0], [1], [0, 0, 1, 1], [], []>} : vector<2x16xf32>, vector<16x32xf32>, vector<2x32xf32> -> vector<2x32xf32>
    %c0_5 = arith.constant 0 : index
    %c0_6 = arith.constant 0 : index
    %4 = vector.load %arg4[%c0_5, %c0_6] : memref<1x32xf32, #tpu.memory_space<vmem>>, vector<1x32xf32>
    %5 = vector.broadcast %4 : vector<1x32xf32> to vector<2x32xf32>
    %6 = arith.addf %3, %5 : vector<2x32xf32>
    %cst_7 = arith.constant 0.000000e+00 : f32
    %7 = vector.broadcast %cst_7 : f32 to vector<2x32xf32>
    %8 = arith.cmpf ogt, %6, %7 : vector<2x32xf32>
    %cst_8 = arith.constant 1.000000e-01 : f32
    %9 = vector.broadcast %cst_8 : f32 to vector<2x32xf32>
    %10 = arith.mulf %9, %6 : vector<2x32xf32>
    %11 = arith.select %8, %6, %10 : vector<2x32xi1>, vector<2x32xf32>
    %c0_9 = arith.constant 0 : index
    %c0_10 = arith.constant 0 : index
    %12 = vector.load %arg5[%c0_9, %c0_10] : memref<32x64xf32, #tpu.memory_space<vmem>>, vector<32x64xf32>
    %cst_11 = arith.constant dense<0.000000e+00> : vector<2x64xf32>
    %13 = tpu.matmul %11, %12, %cst_11 {dimension_numbers = #tpu.dot_dimension_numbers<[1], [0], [0], [1], [0, 0, 1, 1], [], []>} : vector<2x32xf32>, vector<32x64xf32>, vector<2x64xf32> -> vector<2x64xf32>
    %c0_12 = arith.constant 0 : index
    %c0_13 = arith.constant 0 : index
    %14 = vector.load %arg6[%c0_12, %c0_13] : memref<32x64xf32, #tpu.memory_space<vmem>>, vector<32x64xf32>
    %cst_14 = arith.constant dense<0.000000e+00> : vector<2x64xf32>
    %15 = tpu.matmul %1, %14, %cst_14 {dimension_numbers = #tpu.dot_dimension_numbers<[1], [0], [0], [1], [0, 0, 1, 1], [], []>} : vector<2x32xf32>, vector<32x64xf32>, vector<2x64xf32> -> vector<2x64xf32>
    %16 = arith.addf %13, %15 : vector<2x64xf32>
    %c0_15 = arith.constant 0 : index
    %c0_16 = arith.constant 0 : index
    %17 = vector.load %arg7[%c0_15, %c0_16] : memref<1x64xf32, #tpu.memory_space<vmem>>, vector<1x64xf32>
    %18 = vector.broadcast %17 : vector<1x64xf32> to vector<2x64xf32>
    %19 = arith.addf %16, %18 : vector<2x64xf32>
    %20 = vector.extract_strided_slice %19 {offsets = [0, 0], sizes = [2, 32], strides = [1, 1]} : vector<2x64xf32> to vector<2x32xf32>
    %21 = math.tanh %20 : vector<2x32xf32>
    %22 = vector.extract_strided_slice %19 {offsets = [0, 32], sizes = [2, 32], strides = [1, 1]} : vector<2x64xf32> to vector<2x32xf32>
    %c0_17 = arith.constant 0 : index
    %c0_18 = arith.constant 0 : index
    %23 = vector.load %arg8[%c0_17, %c0_18] : memref<32x9xf32, #tpu.memory_space<vmem>>, vector<32x9xf32>
    %cst_19 = arith.constant dense<0.000000e+00> : vector<2x9xf32>
    %24 = tpu.matmul %22, %23, %cst_19 {dimension_numbers = #tpu.dot_dimension_numbers<[1], [0], [0], [1], [0, 0, 1, 1], [], []>} : vector<2x32xf32>, vector<32x9xf32>, vector<2x9xf32> -> vector<2x9xf32>
    %c0_20 = arith.constant 0 : index
    %c0_21 = arith.constant 0 : index
    %25 = vector.load %arg9[%c0_20, %c0_21] : memref<1x9xf32, #tpu.memory_space<vmem>>, vector<1x9xf32>
    %26 = vector.broadcast %25 : vector<1x9xf32> to vector<2x9xf32>
    %27 = arith.addf %24, %26 : vector<2x9xf32>
    %c0_22 = arith.constant 0 : index
    %c0_23 = arith.constant 0 : index
    %28 = vector.load %arg10[%c0_22, %c0_23] : memref<2x9xf32, #tpu.memory_space<vmem>>, vector<2x9xf32>
    tpu.vector_store %arg10[%c0_22, %c0_23], %27 {strides = array<i32>} : memref<2x9xf32, #tpu.memory_space<vmem>>, vector<2x9xf32>,
    %c0_24 = arith.constant 0 : index
    %c0_25 = arith.constant 0 : index
    %29 = vector.load %arg11[%c0_24, %c0_25] : memref<2x32xf32, #tpu.memory_space<vmem>>, vector<2x32xf32>
    tpu.vector_store %arg11[%c0_24, %c0_25], %21 {strides = array<i32>} : memref<2x32xf32, #tpu.memory_space<vmem>>, vector<2x32xf32>,
    return
  }
  func.func @transform_0(%arg0: i32) -> (i32, i32) {
    %c0_i32 = arith.constant 0 : i32
    %c0_i32_0 = arith.constant 0 : i32
    return %arg0, %c0_i32 : i32, i32
  }
  func.func @transform_1(%arg0: i32) -> (i32, i32) {
    %c0_i32 = arith.constant 0 : i32
    %c0_i32_0 = arith.constant 0 : i32
    return %arg0, %c0_i32 : i32, i32
  }
  func.func @transform_2(%arg0: i32) -> (i32, i32) {
    %c0_i32 = arith.constant 0 : i32
    %c0_i32_0 = arith.constant 0 : i32
    %c0_i32_1 = arith.constant 0 : i32
    return %c0_i32, %c0_i32_0 : i32, i32
  }
  func.func @transform_3(%arg0: i32) -> (i32, i32) {
    %c0_i32 = arith.constant 0 : i32
    %c0_i32_0 = arith.constant 0 : i32
    %c0_i32_1 = arith.constant 0 : i32
    return %c0_i32, %c0_i32_0 : i32, i32
  }
  func.func @transform_4(%arg0: i32) -> (i32, i32) {
    %c0_i32 = arith.constant 0 : i32
    %c0_i32_0 = arith.constant 0 : i32
    %c0_i32_1 = arith.constant 0 : i32
    return %c0_i32, %c0_i32_0 : i32, i32
  }
  func.func @transform_5(%arg0: i32) -> (i32, i32) {
    %c0_i32 = arith.constant 0 : i32
    %c0_i32_0 = arith.constant 0 : i32
    %c0_i32_1 = arith.constant 0 : i32
    return %c0_i32, %c0_i32_0 : i32, i32
  }
  func.func @transform_6(%arg0: i32) -> (i32, i32) {
    %c0_i32 = arith.constant 0 : i32
    %c0_i32_0 = arith.constant 0 : i32
    %c0_i32_1 = arith.constant 0 : i32
    return %c0_i32, %c0_i32_0 : i32, i32
  }
  func.func @transform_7(%arg0: i32) -> (i32, i32) {
    %c0_i32 = arith.constant 0 : i32
    %c0_i32_0 = arith.constant 0 : i32
    %c0_i32_1 = arith.constant 0 : i32
    return %c0_i32, %c0_i32_0 : i32, i32
  }
  func.func @transform_8(%arg0: i32) -> (i32, i32) {
    %c0_i32 = arith.constant 0 : i32
    %c0_i32_0 = arith.constant 0 : i32
    %c0_i32_1 = arith.constant 0 : i32
    return %c0_i32, %c0_i32_0 : i32, i32
  }
  func.func @transform_9(%arg0: i32) -> (i32, i32) {
    %c0_i32 = arith.constant 0 : i32
    %c0_i32_0 = arith.constant 0 : i32
    return %arg0, %c0_i32 : i32, i32
  }
  func.func @transform_10(%arg0: i32) -> (i32, i32) {
    %c0_i32 = arith.constant 0 : i32
    %c0_i32_0 = arith.constant 0 : i32
    return %arg0, %c0_i32 : i32, i32
  }
}

</mosaic_0001>

<bundles_post_ra>
// kernel: num_as_mapsum_forward.1
= control target key start
LH: loop header
LB: loop body
LE: loop exit
PB: predicated region body
PF: predicated region fallthrough
CT: control target
= control target key end

     0   :  { %16 = vsyncpa [#allocation3], 0  ;;  %s886_s0 = inlined_call_operand.vmem [shape: f32[2,16], index: 0, kind: input, shape index: {}]   ;;  %s887_s1 = inlined_call_operand.hbm [shape: f32[2,32], index: 1, kind: input, shape index: {}]   ;;  %s888_s2 = inlined_call_operand.hbm [shape: f32[16,32], index: 2, kind: input, shape index: {}]   ;;  %s889_s3 = inlined_call_operand.hbm [shape: f32[1,32], index: 3, kind: input, shape index: {}]   ;;  %s890_s4 = inlined_call_operand.vmem [shape: f32[32,64], index: 4, kind: input, shape index: {}]   ;;  %s891_s5 = inlined_call_operand.vmem [shape: f32[32,64], index: 5, kind: input, shape index: {}]   ;;  %s892_s6 = inlined_call_operand.hbm [shape: f32[1,64], index: 6, kind: input, shape index: {}]   ;;  %s893_s7 = inlined_call_operand.vmem [shape: f32[32,9], index: 7, kind: input, shape index: {}]   ;;  %s894_s8 = inlined_call_operand.hbm [shape: f32[1,9], index: 8, kind: input, shape index: {}]   ;;  %s895_s9 = inlined_call_operand.vmem [shape: f32[2,9], index: 9, kind: output, shape index: {0}]   ;;  %s896_s10 = inlined_call_operand.hbm [shape: f32[2,32], index: 10, kind: output, shape index: {1}]  }
   0x1   :  { %17 = vsyncpa [#allocation6], 0 }
   0x2   :  { %18 = vsyncpa [#allocation9], 0 }
   0x3   :  { %19 = vsyncpa [#allocation4], 0  ;;  %s698_s13 = smov [#allocation5]   ;;  %s558_s17 = scalar_lea.hbm %s888_s2, 256 }
   0x4   :  { %s37_s14 = sshll.u32 %s698_s13, 4  ;;  %p559_p0 = scmp.ne.s32.totalorder %s888_s2, %s558_s17  ;;  %s38_s14 = int_to_ptr.vmem [resolvable:$true] %s37_s14 }
   0x5   :  { %p562_p1 = scmp.lt.u32.totalorder %s558_s17, %s888_s2 }
   0x7   :  { %p564_p2 = pnand %p562_p1, %p559_p0 }
   0x9   :  { %567 = shalt.err (!%p564_p2)
}
   0xa   :  { %s568_s22 = scalar_lea.vmem %s38_s14, 256  ;;  %p573_p4 = scmp.lt.s32.totalorder %s38_s14, %s38_s14 }
   0xb   :  { %p569_p3 = scmp.ne.s32.totalorder %s38_s14, %s568_s22  ;;  %p574_p5 = scmp.lt.s32.totalorder %s568_s22, %s568_s22 }
   0xd   :  { %p575_p6 = por %p574_p5, %p573_p4 }
   0xf   :  { %p576_p7 = pnand %p575_p6, %p569_p3 }
  0x11   :  { %579 = shalt.err (!%p576_p7)
}
  0x12   :  { %s699_s23 = smov 128   ;;  %s700_s24 = smov 8  }
  0x13   :  { %43 = dma.hbm_to_vmem [thread:$0]  %s888_s2, 256, %s38_s14, [#allocation6], %s699_s23, %s699_s23, %s700_s24  }
  0x14   :  { %s701_s27 = smov [#allocation8]   ;;  %s702_s29 = smov [#allocation2]  }
  0x15   :  { %s64_s28 = sshll.u32 %s701_s27, 4  ;;  %s28_s30 = sshll.u32 %s702_s29, 4  ;;  %s65_s28 = int_to_ptr.vmem [resolvable:$true] %s64_s28  ;;  %s29_s30 = int_to_ptr.vmem [resolvable:$true] %s28_s30 }
  0x16   :  { %s580_s13 = scalar_lea.hbm %s892_s6, 16 }
  0x17   :  { %p581_p8 = scmp.ne.s32.totalorder %s892_s6, %s580_s13  ;;  %p584_p9 = scmp.lt.u32.totalorder %s580_s13, %s892_s6 }
  0x19   :  { %p586_p10 = pnand %p584_p9, %p581_p8 }
  0x1b   :  { %589 = shalt.err (!%p586_p10)
}
  0x1c   :  { %s590_s2 = scalar_lea.vmem %s65_s28, 16  ;;  %s594_s14 = scalar_lea.vmem %s65_s28, 32 }
  0x1d   :  { %p591_p11 = scmp.ne.s32.totalorder %s65_s28, %s590_s2  ;;  %p595_p12 = scmp.lt.s32.totalorder %s65_s28, %s65_s28 }
  0x1e   :  { %p596_p13 = scmp.lt.s32.totalorder %s594_s14, %s590_s2 }
  0x20   :  { %p597_p0 = por %p596_p13, %p595_p12 }
  0x22   :  { %p598_p1 = pnand %p597_p0, %p591_p11 }
  0x24   :  { %601 = shalt.err (!%p598_p1)
}
  0x25   :  { %67 = dma.hbm_to_vmem [thread:$0]  %s892_s6, 16, %s65_s28, [#allocation9]  }
  0x26   :  { %s602_s23 = scalar_lea.hbm %s887_s1, 32 }
  0x27   :  { %p603_p2 = scmp.ne.s32.totalorder %s887_s1, %s602_s23  ;;  %p606_p3 = scmp.lt.u32.totalorder %s602_s23, %s887_s1 }
  0x29   :  { %p608_p4 = pnand %p606_p3, %p603_p2 }
  0x2b   :  { %611 = shalt.err (!%p608_p4)
}
  0x2c   :  { %s612_s29 = scalar_lea.vmem %s29_s30, 32  ;;  %p617_p6 = scmp.lt.s32.totalorder %s29_s30, %s29_s30 }
  0x2d   :  { %p613_p5 = scmp.ne.s32.totalorder %s29_s30, %s612_s29  ;;  %p618_p7 = scmp.lt.s32.totalorder %s612_s29, %s612_s29 }
  0x2f   :  { %p619_p8 = por %p618_p7, %p617_p6 }
  0x31   :  { %p620_p9 = pnand %p619_p8, %p613_p5 }
  0x33   :  { %623 = shalt.err (!%p620_p9)
}
  0x34   :  { %31 = dma.hbm_to_vmem [thread:$0]  %s887_s1, 32, %s29_s30, [#allocation3]  }
  0x35   :  { %s703_s11 = smov [#allocation7]   ;;  %s704_s13 = smov [#allocation10]  }
  0x36   :  { %s50_s12 = sshll.u32 %s703_s11, 4  ;;  %s76_s15 = sshll.u32 %s704_s13, 4  ;;  %s51_s12 = int_to_ptr.vmem [resolvable:$true] %s50_s12  ;;  %s77_s15 = int_to_ptr.vmem [resolvable:$true] %s76_s15 }
  0x37   :  { %s624_s18 = scalar_lea.hbm %s889_s3, 16 }
  0x38   :  { %p625_p10 = scmp.ne.s32.totalorder %s889_s3, %s624_s18  ;;  %p628_p11 = scmp.lt.u32.totalorder %s624_s18, %s889_s3 }
  0x3a   :  { %p630_p12 = pnand %p628_p11, %p625_p10 }
  0x3c   :  { %633 = shalt.err (!%p630_p12)
}
  0x3d   :  { %s634_s1 = scalar_lea.vmem %s51_s12, 16  ;;  %s638_s30 = scalar_lea.vmem %s51_s12, 32 }
  0x3e   :  { %p635_p13 = scmp.ne.s32.totalorder %s51_s12, %s634_s1  ;;  %p639_p0 = scmp.lt.s32.totalorder %s51_s12, %s51_s12 }
  0x3f   :  { %p640_p1 = scmp.lt.s32.totalorder %s638_s30, %s634_s1 }
  0x41   :  { %p641_p2 = por %p640_p1, %p639_p0 }
  0x43   :  { %p642_p3 = pnand %p641_p2, %p635_p13 }
  0x45   :  { %645 = shalt.err (!%p642_p3)
}
  0x46   :  { %53 = dma.hbm_to_vmem [thread:$0]  %s889_s3, 16, %s51_s12, [#allocation6]  }
  0x47   :  { %s646_s25 = scalar_lea.hbm %s894_s8, 16 }
  0x48   :  { %p647_p4 = scmp.ne.s32.totalorder %s894_s8, %s646_s25  ;;  %p650_p5 = scmp.lt.u32.totalorder %s646_s25, %s894_s8 }
  0x4a   :  { %p652_p6 = pnand %p650_p5, %p647_p4 }
  0x4c   :  { %655 = shalt.err (!%p652_p6)
}
  0x4d   :  { %s656_s28 = scalar_lea.vmem %s77_s15, 16  ;;  %s660_s11 = scalar_lea.vmem %s77_s15, 32 }
  0x4e   :  { %p657_p7 = scmp.ne.s32.totalorder %s77_s15, %s656_s28  ;;  %p661_p8 = scmp.lt.s32.totalorder %s77_s15, %s77_s15 }
  0x4f   :  { %p662_p9 = scmp.lt.s32.totalorder %s660_s11, %s656_s28 }
  0x51   :  { %p663_p10 = por %p662_p9, %p661_p8 }
  0x53   :  { %p664_p11 = pnand %p663_p10, %p657_p7 }
  0x55   :  { %667 = shalt.err (!%p664_p11)
}
  0x56   :  { %79 = dma.hbm_to_vmem [thread:$0]  %s894_s8, 16, %s77_s15, [#allocation9]  }
  0x57   :  { %690 = dma.done.wait [#allocation3], 32  }
  0x58   :  { %691 = vsyncadd [#allocation3], 4294967264 }
  0x59   :  { %692 = dma.done.wait [#allocation6], 272  }
  0x5a   :  { %693 = vsyncadd [#allocation6], 4294967024 }
  0x5b   :  { %694 = dma.done.wait [#allocation9], 32  }
  0x5c   :  { %695 = vsyncadd [#allocation9], 4294967264  ;;  %v705_v0 = vmov 0.0|0.0   ;;  %vm706_vm0 = vmmov 0   ;;  %v707_v1 = vmov 0.0   ;;  %v97_v2 = vld [vmem:[#allocation5] sm:$0xff] }
  0x5d   :  { %523 = vmatprep.subr.bf16.mxu0 %v705_v0  ;;  %487 = vmatprep.mubr.msk.f32.mxu0 %vm706_vm0, %v707_v1  ;;  %v98_v3 = vld [vmem:[#allocation5 + $0x8] sm:$0xff]  ;;  %v187_v5 = vld [vmem:[%s891_s5] sm:$0xff]  ;;  %vm106_vm1 = vcmask 130048   ;;  %v190_v13 = vld [vmem:[%s891_s5 + $0x18] sm:$0xff]  ;;  %vm191_vm2 = vcmask 261120   ;;  %s708_s3 = smov 96  }
  0x5e   :  { %526 = vmatprep.subr.bf16.mxu1 %v705_v0  ;;  %498 = vmatprep.mubr.msk.f32.mxu1 %vm706_vm0, %v707_v1  ;;  %v524_v4 = vpack.c.bf16 %v98_v3, %v97_v2  ;;  %v188_v6 = vld [vmem:[%s891_s5 + $0x8] sm:$0xff]  ;;  %v183_v7 = vld [vmem:[%s890_s4] sm:$0xff]  ;;  %v189_v12 = vld [vmem:[%s891_s5 + $0x10] sm:$0xff]  ;;  %vm435_vm4 = vcmask 254976   ;;  %s709_s12 = smov [#allocation11]  }
  0x5f   :  { %v527_v8 = vpack.c.bf16 %v188_v6, %v187_v5  ;;  %v184_v9 = vld [vmem:[%s890_s4 + $0x8] sm:$0xff]  ;;  %v95_v10 = vld [vmem:[%s886_s0] sm:$0x3]  ;;  %v530_v14 = vpack.c.bf16 %v190_v13, %v189_v12  ;;  %v185_v15 = vld [vmem:[%s890_s4 + $0x10] sm:$0xff] }
  0x60   :  { %525 = vmatpush3.bf16.msra.mxu0 %v524_v4  ;;  %v533_v11 = vpack.c.bf16 %v184_v9, %v183_v7  ;;  %v186_v16 = vld [vmem:[%s890_s4 + $0x18] sm:$0xff]  ;;  %v96_v18 = vld [vmem:[#allocation2] sm:$0x3]  ;;  %v458_v19 = vld [vmem:[#allocation7] ss:$0 sm:$0xff] }
  0x61   :  { %528 = vmatpush3.bf16.msra.mxu1 %v527_v8  ;;  %532 = vmatprep.subr.bf16.mxu0 %v705_v0  ;;  %v536_v17 = vpack.c.bf16 %v186_v16, %v185_v15  ;;  %v347_v27 = vld [vmem:[%s893_s7] sm:$0xff]  ;;  %v348_v28 = vld [vmem:[%s893_s7 + $0x8] sm:$0xff]  ;;  %v349_v29 = vld [vmem:[%s893_s7 + $0x10] sm:$0xff] }
  0x62   :  { %529 = vmatprep.subr.bf16.mxu1 %v705_v0  ;;  %v539_v30 = vpack.c.bf16 %v348_v28, %v347_v27  ;;  %v350_v31 = vld [vmem:[%s893_s7 + $0x18] sm:$0xff]  ;;  %v462_v34 = vld [vmem:[#allocation8] ss:$0 sm:$0xff]  ;;  %s445_s7 = sshll.u32 %s709_s12, 4  ;;  %s446_s7 = int_to_ptr.vmem [resolvable:$true] %s445_s7 }
  0x63   :  { %488 = vmatmul.mubr.msk.f32.vlgmr.msra.gmra.mrb[0].mxu0 %vm106_vm1, %v95_v10  ;;  %v542_v32 = vpack.c.bf16 %v350_v31, %v349_v29  ;;  %s668_s13 = scalar_lea.vmem %s446_s7, 32  ;;  %p673_p13 = scmp.lt.s32.totalorder %s446_s7, %s446_s7 }
  0x64   :  { %534 = vmatpush3.bf16.msra.mxu0 %v533_v11  ;;  %509 = vmatprep.mubr.msk.f32.mxu0 %vm706_vm0, %v707_v1  ;;  %p669_p12 = scmp.ne.s32.totalorder %s446_s7, %s668_s13  ;;  %p674_p0 = scmp.lt.s32.totalorder %s668_s13, %s668_s13 }
  0x65   :  { %535 = vmatprep.subr.bf16.mxu0 %v705_v0  ;;  %531 = vmatpush3.bf16.msra.mxu1 %v530_v14 }
  0x66   :  { %538 = vmatprep.subr.bf16.mxu1 %v705_v0  ;;  %p675_p1 = por %p674_p0, %p673_p13 }
  0x68   :  { %537 = vmatpush3.bf16.msra.mxu0 %v536_v17  ;;  %499 = vmatmul.mubr.msk.f32.vlgmr.msra.gmra.mrb[0].mxu1 %vm191_vm2, %v96_v18  ;;  %p676_p2 = pnand %p675_p1, %p669_p12 }
  0x69   :  { %520 = vmatprep.mubr.msk.f32.mxu1 %vm706_vm0, %v707_v1  ;;  %540 = vmatpush3.bf16.msra.mxu1 %v539_v30 }
  0x6a   :  { %541 = vmatprep.subr.bf16.mxu1 %v705_v0 }
  0x6d   :  { %543 = vmatpush3.bf16.msra.mxu1 %v542_v32 }
 0x136   :  { %v176_v20 = vpop.f32.mrb[0].mxu0 }
 0x137   :  { %v177_v21 = vadd.f32 %v458_v19, %v176_v20  ;;  %v489_v22 = vpop.f32.mrb[1].mxu0 }
 0x139   :  { %vm180_vm3 = vcmp.gt.f32.partialorder %v177_v21, 0.0  ;;  %v181_v23 = vmul.f32 0.1, %v177_v21 }
 0x13b   :  { %v182_v24 = vsel %vm180_vm3, %v177_v21, %v181_v23  ;;  %v261_v25 = vpop.f32.mrb[0].mxu1 }
 0x13c   :  { %510 = vmatmul.mubr.msk.f32.vlgmr.msra.gmra.mrb[2].mxu0 %vm191_vm2, %v182_v24  ;;  %v500_v26 = vpop.f32.mrb[1].mxu1 }
 0x20f   :  { %v334_v33 = vpop.f32.mrb[2].mxu0 }
 0x210   :  { %v335_v35 = vadd.f32 %v334_v33, %v261_v25  ;;  %v511_v36 = vpop.f32.mrb[3].mxu0 }
 0x212   :  { %v345_v37 = vadd.f32 %v462_v34, %v335_v35 }
 0x214   :  { %556 = vtanh.f32 %v345_v37  ;;  %359 = vrot.lane.b32.xlu0 %v345_v37, %s708_s3 }
 0x21e   :  { %v557_v38 = vpop.eup %556 }
 0x21f   :  { %436 = vst.msk [vmem:[#allocation11] sm:$0x3] %vm435_vm4, %v557_v38 }
 0x286   :  { %v360_v39 = vpop.permute.xlu0 %359 }
 0x287   :  { %521 = vmatmul.mubr.msk.f32.vlgmr.msra.gmra.mrb[2].mxu1 %vm191_vm2, %v360_v39 }
 0x288   :  { %679 = shalt.err (!%p676_p2)
}
 0x289   :  { %s680_s16 = scalar_lea.hbm %s896_s10, 32 }
 0x28a   :  { %p681_p3 = scmp.ne.s32.totalorder %s896_s10, %s680_s16  ;;  %p684_p4 = scmp.lt.u32.totalorder %s680_s16, %s896_s10 }
 0x28c   :  { %p686_p5 = pnand %p684_p4, %p681_p3 }
 0x28e   :  { %689 = shalt.err (!%p686_p5)
}
 0x28f   :  { %448 = dma.vmem_to_hbm [thread:$0]  %s446_s7, 32, %s896_s10, [#allocation4]   ;;  %v463_v40 = vld [vmem:[#allocation10] ss:$0 sm:$0xff]  ;;  %vm433_vm5 = vcmask 66560  }
 0x35a   :  { %v429_v41 = vpop.f32.mrb[2].mxu1 }
 0x35b   :  { %v430_v42 = vadd.f32 %v463_v40, %v429_v41  ;;  %v522_v43 = vpop.f32.mrb[3].mxu1 }
 0x35d   :  { %434 = vst.msk [vmem:[%s895_s9] sm:$0x3] %vm433_vm5, %v430_v42 }
 0x35e   :  { %696 = dma.done.wait [#allocation4], 32  }
 0x35f   :  { %697 = vsyncadd [#allocation4], 4294967264 }
 0x360   :  { %454 = vsyncpa [#allocation3], 1 }
 0x361   :  { %455 = vsyncpa [#allocation6], 1 }
 0x362   :  { %456 = vsyncpa [#allocation9], 1 }
 0x363   :  { %457 = vsyncpa [#allocation4], 1 }

</bundles_post_ra>
